<compile_context>
chip_gen: v5e
topology: v5e:2x2
jax: 0.10.0
libtpu: 0.0.40
codegen_flags: <defaults>
</compile_context>

<pallas_src>
import functools

import jax
import jax.numpy as jnp
from jax.experimental import pallas as pl
from jax.experimental.pallas import tpu as pltpu

_LANES = 128
_ACC_ROWS = 32  # accumulator sublane rows (4 f32 vregs); also the row-pad unit


def _round_up(x, m):
    return -(-x // m) * m


def _default_num_splits():
    """2 grid splits on megacore (v7x), 1 on single-TensorCore chips."""
    try:
        kind = jax.devices()[0].device_kind.lower()
    except Exception:  # pragma: no cover - backend not initialised
        return 1
    return 2 if "v7" in kind else 1


def _contrastive_loss_kernel(d_ref, l_ref, out_ref, acc_ref, *, margin,
                             valid_rows, needs_mask):
    """Per-tile elementwise contrastive loss + running (32,128) partial sum.

    Grid: (num_splits, steps_per_split), semantics ("parallel", "arbitrary").
    acc_ref is a (32, 128) f32 VMEM scratch accumulator persisting across the
    arbitrary axis; the final step of each split writes its partial sum into
    that split's (1, 32, 128) output block.
    """
    step = pl.program_id(1)

    @pl.when(step == 0)
    def _():
        acc_ref[...] = jnp.zeros_like(acc_ref)

    # Inputs arrive in their HBM dtype (bf16 / int8 / bool OK); cast to f32
    # in-register -- free VPU work hidden under the DMA.
    d = d_ref[...].astype(jnp.float32)
    lab = l_ref[...].astype(jnp.float32)

    d2 = d * d
    c = jnp.maximum(margin - d, 0.0)
    # (1-lab)*d2 + lab*c2  ==  d2 + lab*(c2 - d2)   (fewer VPU ops, exact for
    # soft labels too)
    per_elem = d2 + lab * (c * c - d2)

    tile_rows = per_elem.shape[0]

    if needs_mask:
        # Only the last global block overruns the array; its out-of-bounds
        # rows hold unspecified data (possibly NaN/Inf), so SELECT zero --
        # never multiply by a mask.
        block = pl.program_id(0) * pl.num_programs(1) + step
        row_start = block * tile_rows
        row_ids = row_start + jax.lax.broadcasted_iota(
            jnp.int32, per_elem.shape, 0)
        per_elem = jnp.where(row_ids < valid_rows, per_elem, 0.0)

    # Pure VPU adds onto 4 independent accumulator vregs; the cross-lane
    # reduce happens once, in the wrapper, over num_splits*32*128 values.
    acc_ref[...] += per_elem.reshape(
        tile_rows // _ACC_ROWS, _ACC_ROWS, _LANES).sum(axis=0)

    @pl.when(step == pl.num_programs(1) - 1)
    def _():
        out_ref[...] = acc_ref[...][None, :, :]


def contrastive_loss(euclidean_distance, label, margin=2.0, *,
                     tile_rows=2048, num_splits=None):
    """Pallas contrastive loss. Accepts any matching input shapes.

    Dtypes are preserved end-to-end (pass bf16 distances / int8 or bool
    labels to cut HBM traffic); the kernel casts to f32 internally.
    """
    assert euclidean_distance.shape == label.shape

    d_flat = euclidean_distance.reshape(-1)        # no upcast in the wrapper
    l_flat = label.reshape(-1)                     # dtype kept as-is
    n = d_flat.size                                # divisor of the mean
    assert n > 0

    # Tiny pad (< 4096 zero elements) only to reach a whole number of
    # (32, 128) row groups; skipped entirely when already aligned.  Padded
    # elements have d = 0, label = 0 and contribute exactly 0 to the sum.
    padded_n = _round_up(n, _ACC_ROWS * _LANES)
    pad = padded_n - n
    if pad:
        d_flat = jnp.pad(d_flat, (0, pad))
        l_flat = jnp.pad(l_flat, (0, pad))
    M = padded_n // _LANES                         # multiple of 32
    d_p = d_flat.reshape(M, _LANES)
    l_p = l_flat.reshape(M, _LANES)

    # Tile selection: multiples of 32 rows (valid min-tile for f32/bf16/int8),
    # shrunk for small inputs.
    tile_rows = _round_up(max(int(tile_rows), _ACC_ROWS), _ACC_ROWS)
    tile_rows = min(tile_rows, M)

    total_steps = pl.cdiv(M, tile_rows)
    needs_mask = (M % tile_rows) != 0              # last block overruns M

    if num_splits is None:
        num_splits = _default_num_splits()
    # Only split when it divides the step count -> no fully-OOB blocks.
    if num_splits < 1 or total_steps % num_splits != 0:
        num_splits = 1
    steps_per_split = total_steps // num_splits

    # VMEM budget: 2 double-buffered input tiles per step (+ tiny scratch/out).
    tile_bytes = tile_rows * _LANES * (
        jnp.dtype(d_p.dtype).itemsize + jnp.dtype(l_p.dtype).itemsize)
    vmem_limit = None
    if 2 * tile_bytes > (12 << 20):                # only for very large tiles
        vmem_limit = min(2 * tile_bytes + (4 << 20), 60 << 20)

    kernel = functools.partial(
        _contrastive_loss_kernel,
        margin=float(margin), valid_rows=int(M), needs_mask=bool(needs_mask))

    partials = pl.pallas_call(
        kernel,
        out_shape=jax.ShapeDtypeStruct((num_splits, _ACC_ROWS, _LANES),
                                       jnp.float32),
        grid_spec=pltpu.PrefetchScalarGridSpec(
            num_scalar_prefetch=0,
            grid=(num_splits, steps_per_split),
            in_specs=[
                pl.BlockSpec((tile_rows, _LANES),
                             lambda c, i: (c * steps_per_split + i, 0)),
                pl.BlockSpec((tile_rows, _LANES),
                             lambda c, i: (c * steps_per_split + i, 0)),
            ],
            out_specs=pl.BlockSpec((1, _ACC_ROWS, _LANES),
                                   lambda c, i: (c, 0, 0)),
            scratch_shapes=[pltpu.VMEM((_ACC_ROWS, _LANES), jnp.float32)],
        ),
        compiler_params=pltpu.CompilerParams(
            # parallel split (both TCs on v7x), sequential reduction axis
            dimension_semantics=("parallel", "arbitrary"),
            vmem_limit_bytes=vmem_limit,
        ),
    )(d_p, l_p)

    # Tiny final reduce over num_splits*32*128 partial sums; divide by the
    # ORIGINAL (unpadded) element count.
    return jnp.sum(partials) / jnp.float32(n)


def contrastive_loss_ref(euclidean_distance, label, margin=2.0):
    """Pure-JAX reference (mirrors the PyTorch forward exactly)."""
    d = euclidean_distance.astype(jnp.float32)
    lab = label.astype(jnp.float32)
    return jnp.mean(
        (1.0 - lab) * jnp.power(d, 2)
        + lab * jnp.power(jnp.maximum(margin - d, 0.0), 2)
    )


if __name__ == "__main__":
    key = jax.random.PRNGKey(0)
    k1, k2, k3, k4 = jax.random.split(key, 4)
    margin = 2.0

    # Test 1: typical usage -- f32 pairwise distances + f32 binary labels.
    d1 = jax.random.uniform(k1, (16, 128), jnp.float32, 0.0, 4.0)
    l1 = jax.random.bernoulli(k2, 0.5, (16, 128)).astype(jnp.float32)
    out1 = jax.block_until_ready(contrastive_loss(d1, l1, margin))
    ref1 = contrastive_loss_ref(d1, l1, margin)
    assert jnp.allclose(out1, ref1, rtol=1e-5, atol=1e-5), (out1, ref1)

    # Test 2: ragged-tail masking (M % tile_rows != 0), forced 2-way split
    # (sequential on v5e/v6e, megacore on v7x), narrow int8 labels.
    d2 = jax.random.uniform(k3, (96, 128), jnp.float32, 0.0, 4.0)
    l2 = jax.random.bernoulli(k4, 0.5, (96, 128)).astype(jnp.int8)
    out2 = jax.block_until_ready(
        contrastive_loss(d2, l2, margin, tile_rows=64, num_splits=2))
    ref2 = contrastive_loss_ref(d2, l2, margin)
    assert jnp.allclose(out2, ref2, rtol=1e-5, atol=1e-5), (out2, ref2)

    # Test 3: non-aligned element count (exercises the small pad-to-4096 path).
    d3 = jax.random.uniform(k1, (3, 5, 70), jnp.float32, 0.0, 4.0)
    l3 = jax.random.bernoulli(k2, 0.5, (3, 5, 70)).astype(jnp.float32)
    out3 = jax.block_until_ready(contrastive_loss(d3, l3, margin, tile_rows=32))
    ref3 = contrastive_loss_ref(d3, l3, margin)
    assert jnp.allclose(out3, ref3, rtol=1e-5, atol=1e-5), (out3, ref3)

    print("KERNEL_OK")
</pallas_src>

<mosaic_0001>
module attributes {stable_mosaic.version = 11 : i64} {
  func.func @_contrastive_loss_kernel(%arg0: i32, %arg1: i32, %arg2: memref<32x128xf32, #tpu.memory_space<vmem>>, %arg3: memref<32x128xf32, #tpu.memory_space<vmem>>, %arg4: memref<1x32x128xf32, #tpu.memory_space<vmem>>, %arg5: memref<32x128xf32, #tpu.memory_space<vmem>>) attributes {dimension_semantics = [#tpu.dimension_semantics<parallel>, #tpu.dimension_semantics<arbitrary>], iteration_bounds = array<i64: 1, 1>, scalar_prefetch = 0 : i64, scratch_operands = 1 : i64, tpu.core_type = #tpu.core_type<tc>, window_params = [{transform_indices = @transform_0, window_bounds = array<i64: 32, 128>}, {transform_indices = @transform_1, window_bounds = array<i64: 32, 128>}, {transform_indices = @transform_2, window_bounds = array<i64: 1, 32, 128>}]} {
    %c0_i32 = arith.constant 0 : i32
    %0 = arith.cmpi eq, %arg1, %c0_i32 : i32
    %1 = arith.extui %0 : i1 to i32
    %c0_i32_0 = arith.constant 0 : i32
    %2 = arith.cmpi ne, %1, %c0_i32_0 : i32
    scf.if %2 {
      %cst_12 = arith.constant 0.000000e+00 : f32
      %22 = vector.broadcast %cst_12 : f32 to vector<32x128xf32>
      %c0_13 = arith.constant 0 : index
      %c0_14 = arith.constant 0 : index
      %23 = vector.load %arg5[%c0_13, %c0_14] : memref<32x128xf32, #tpu.memory_space<vmem>>, vector<32x128xf32>
      tpu.vector_store %arg5[%c0_13, %c0_14], %22 {strides = array<i32>} : memref<32x128xf32, #tpu.memory_space<vmem>>, vector<32x128xf32>,
    } else {
    }
    %c0 = arith.constant 0 : index
    %c0_1 = arith.constant 0 : index
    %3 = vector.load %arg2[%c0, %c0_1] : memref<32x128xf32, #tpu.memory_space<vmem>>, vector<32x128xf32>
    %c0_2 = arith.constant 0 : index
    %c0_3 = arith.constant 0 : index
    %4 = vector.load %arg3[%c0_2, %c0_3] : memref<32x128xf32, #tpu.memory_space<vmem>>, vector<32x128xf32>
    %5 = arith.mulf %3, %3 : vector<32x128xf32>
    %cst = arith.constant 2.000000e+00 : f32
    %6 = vector.broadcast %cst : f32 to vector<32x128xf32>
    %7 = arith.subf %6, %3 : vector<32x128xf32>
    %cst_4 = arith.constant 0.000000e+00 : f32
    %8 = vector.broadcast %cst_4 : f32 to vector<32x128xf32>
    %9 = arith.maximumf %7, %8 : vector<32x128xf32>
    %10 = arith.mulf %9, %9 : vector<32x128xf32>
    %11 = arith.subf %10, %5 : vector<32x128xf32>
    %12 = arith.mulf %4, %11 : vector<32x128xf32>
    %13 = arith.addf %5, %12 : vector<32x128xf32>
    %c0_5 = arith.constant 0 : index
    %c0_6 = arith.constant 0 : index
    %14 = vector.load %arg5[%c0_5, %c0_6] : memref<32x128xf32, #tpu.memory_space<vmem>>, vector<32x128xf32>
    %15 = vector.shape_cast %13 : vector<32x128xf32> to vector<1x32x128xf32>
    %cst_7 = arith.constant dense<0.000000e+00> : vector<32x128xf32>
    %16 = vector.multi_reduction <add>, %15, %cst_7 [0] : vector<1x32x128xf32> to vector<32x128xf32>
    %17 = arith.addf %14, %16 : vector<32x128xf32>
    %c0_8 = arith.constant 0 : index
    %c0_9 = arith.constant 0 : index
    %18 = vector.load %arg5[%c0_8, %c0_9] : memref<32x128xf32, #tpu.memory_space<vmem>>, vector<32x128xf32>
    tpu.vector_store %arg5[%c0_8, %c0_9], %17 {strides = array<i32>} : memref<32x128xf32, #tpu.memory_space<vmem>>, vector<32x128xf32>,
    %c0_i32_10 = arith.constant 0 : i32
    %19 = arith.cmpi eq, %arg1, %c0_i32_10 : i32
    %20 = arith.extui %19 : i1 to i32
    %c0_i32_11 = arith.constant 0 : i32
    %21 = arith.cmpi ne, %20, %c0_i32_11 : i32
    scf.if %21 {
      %c0_12 = arith.constant 0 : index
      %c0_13 = arith.constant 0 : index
      %22 = vector.load %arg5[%c0_12, %c0_13] : memref<32x128xf32, #tpu.memory_space<vmem>>, vector<32x128xf32>
      %23 = vector.shape_cast %22 : vector<32x128xf32> to vector<1x32x128xf32>
      %c0_14 = arith.constant 0 : index
      %c0_15 = arith.constant 0 : index
      %c0_16 = arith.constant 0 : index
      %24 = vector.load %arg4[%c0_14, %c0_15, %c0_16] : memref<1x32x128xf32, #tpu.memory_space<vmem>>, vector<1x32x128xf32>
      tpu.vector_store %arg4[%c0_14, %c0_15, %c0_16], %23 {strides = array<i32>} : memref<1x32x128xf32, #tpu.memory_space<vmem>>, vector<1x32x128xf32>,
    } else {
    }
    return
  }
  func.func @transform_0(%arg0: i32, %arg1: i32) -> (i32, i32) {
    %c1_i32 = arith.constant 1 : i32
    %0 = arith.muli %arg0, %c1_i32 : i32
    %1 = arith.addi %0, %arg1 : i32
    %c0_i32 = arith.constant 0 : i32
    %c0_i32_0 = arith.constant 0 : i32
    return %1, %c0_i32 : i32, i32
  }
  func.func @transform_1(%arg0: i32, %arg1: i32) -> (i32, i32) {
    %c1_i32 = arith.constant 1 : i32
    %0 = arith.muli %arg0, %c1_i32 : i32
    %1 = arith.addi %0, %arg1 : i32
    %c0_i32 = arith.constant 0 : i32
    %c0_i32_0 = arith.constant 0 : i32
    return %1, %c0_i32 : i32, i32
  }
  func.func @transform_2(%arg0: i32, %arg1: i32) -> (i32, i32, i32) {
    %c0_i32 = arith.constant 0 : i32
    %c0_i32_0 = arith.constant 0 : i32
    %c0_i32_1 = arith.constant 0 : i32
    return %arg0, %c0_i32, %c0_i32_0 : i32, i32, i32
  }
}

</mosaic_0001>

<bundles_post_ra>
// kernel: tpu_custom_call.1
= control target key start
LH: loop header
LB: loop body
LE: loop exit
PB: predicated region body
PF: predicated region fallthrough
CT: control target
= control target key end

     0   :  { %7 = vsyncpa [#allocation4], 0  ;;  %s268_s0 = inlined_call_operand.hbm [shape: f32[32,128], index: 0, kind: input, shape index: {}]   ;;  %s269_s1 = inlined_call_operand.hbm [shape: f32[32,128], index: 1, kind: input, shape index: {}]   ;;  %s270_s2 = inlined_call_operand.hbm [shape: f32[1,32,128], index: 2, kind: output, shape index: {}]  }
   0x1   :  { %8 = vsyncpa [#allocation7], 0 }
   0x2   :  { %9 = vsyncpa [#allocation5], 0  ;;  %s18_s11 = sshll.u32 %s268_s0, 4  ;;  %s230_s12 = smov [#allocation3]   ;;  %s19_s11 = int_to_ptr.hbm [resolvable:$true] %s18_s11 }
   0x3   :  { %s20_s13 = sshll.u32 %s230_s12, 4  ;;  %s35_s16 = sshll.u32 %s269_s1, 4  ;;  %s21_s13 = int_to_ptr.vmem [resolvable:$true] %s20_s13  ;;  %s36_s16 = int_to_ptr.hbm [resolvable:$true] %s35_s16 }
   0x4   :  { %s231_s17 = smov 128   ;;  %s232_s18 = smov 8  }
   0x5   :  { %26 = dma.hbm_to_vmem [thread:$0]  %s19_s11, 512, %s21_s13, [#allocation4], %s231_s17, %s231_s17, %s232_s18  }
   0x6   :  { %s233_s19 = smov [#allocation6]  }
   0x7   :  { %s37_s20 = sshll.u32 %s233_s19, 4  ;;  %s38_s20 = int_to_ptr.vmem [resolvable:$true] %s37_s20 }
   0x8   :  { %43 = dma.hbm_to_vmem [thread:$0]  %s36_s16, 512, %s38_s20, [#allocation7], %s231_s17, %s231_s17, %s232_s18  }
   0x9   :  { %224 = dma.done.wait [#allocation4], 512  }
   0xa   :  { %225 = vsyncadd [#allocation4], 4294966784 }
   0xb   :  { %226 = dma.done.wait [#allocation7], 512  }
   0xc   :  { %227 = vsyncadd [#allocation7], 4294966784  ;;  %v64_v0 = vld [vmem:[#allocation3] sm:$0xff]  ;;  %v65_v1 = vld [vmem:[#allocation3 + $0x8] sm:$0xff]  ;;  %s234_s0 = smov [#allocation8]   ;;  %s133_s23 = sshll.u32 %s270_s2, 4  ;;  %s134_s23 = int_to_ptr.hbm [resolvable:$true] %s133_s23 }
   0xd   :  { %v76_v2 = vsub.f32 2.0, %v64_v0  ;;  %v77_v3 = vsub.f32 2.0, %v65_v1  ;;  %v66_v4 = vld [vmem:[#allocation3 + $0x10] sm:$0xff]  ;;  %v72_v5 = vmul.f32 %v64_v0, %v64_v0  ;;  %v67_v7 = vld [vmem:[#allocation3 + $0x18] sm:$0xff]  ;;  %v73_v9 = vmul.f32 %v65_v1, %v65_v1  ;;  %v68_v18 = vld [vmem:[#allocation6] sm:$0xff]  ;;  %s131_s1 = sshll.u32 %s234_s0, 4  ;;  %s132_s1 = int_to_ptr.vmem [resolvable:$true] %s131_s1 }
   0xe   :  { %v78_v6 = vsub.f32 2.0, %v66_v4  ;;  %v79_v11 = vsub.f32 2.0, %v67_v7  ;;  %v74_v12 = vmul.f32 %v66_v4, %v66_v4  ;;  %v75_v16 = vmul.f32 %v67_v7, %v67_v7  ;;  %v69_v19 = vld [vmem:[#allocation6 + $0x8] sm:$0xff]  ;;  %v70_v23 = vld [vmem:[#allocation6 + $0x10] sm:$0xff]  ;;  %v71_v26 = vld [vmem:[#allocation6 + $0x18] sm:$0xff] }
   0xf   :  { %v80_v8 = vmax.f32 %v76_v2, 0.0  ;;  %v81_v10 = vmax.f32 %v77_v3, 0.0 }
  0x10   :  { %v82_v13 = vmax.f32 %v78_v6, 0.0  ;;  %v83_v17 = vmax.f32 %v79_v11, 0.0 }
  0x11   :  { %v84_v14 = vmul.f32 %v80_v8, %v80_v8  ;;  %v85_v15 = vmul.f32 %v81_v10, %v81_v10 }
  0x12   :  { %v86_v20 = vmul.f32 %v82_v13, %v82_v13  ;;  %v87_v24 = vmul.f32 %v83_v17, %v83_v17 }
  0x13   :  { %v88_v21 = vsub.f32 %v84_v14, %v72_v5  ;;  %v89_v22 = vsub.f32 %v85_v15, %v73_v9 }
  0x14   :  { %v90_v25 = vsub.f32 %v86_v20, %v74_v12  ;;  %v91_v29 = vsub.f32 %v87_v24, %v75_v16 }
  0x15   :  { %v92_v27 = vmul.f32 %v88_v21, %v68_v18  ;;  %v93_v28 = vmul.f32 %v89_v22, %v69_v19 }
  0x16   :  { %v94_v30 = vmul.f32 %v90_v25, %v70_v23  ;;  %v95_v33 = vmul.f32 %v91_v29, %v71_v26 }
  0x17   :  { %v96_v31 = vadd.f32 %v92_v27, %v72_v5  ;;  %v97_v32 = vadd.f32 %v93_v28, %v73_v9 }
  0x18   :  { %v98_v34 = vadd.f32 %v94_v30, %v74_v12  ;;  %v99_v35 = vadd.f32 %v95_v33, %v75_v16 }
  0x19   :  { %123 = vst [vmem:[#allocation8] sm:$0xff] %v96_v31 }
  0x1a   :  { %124 = vst [vmem:[#allocation8 + $0x8] sm:$0xff] %v97_v32 }
  0x1b   :  { %125 = vst [vmem:[#allocation8 + $0x10] sm:$0xff] %v98_v34 }
  0x1c   :  { %126 = vst [vmem:[#allocation8 + $0x18] sm:$0xff] %v99_v35 }
  0x1d   :  { %139 = dma.vmem_to_hbm [thread:$0]  %s132_s1, 512, %s134_s23, [#allocation5], %s231_s17, %s231_s17, %s232_s18  }
  0x1e   :  { %228 = dma.done.wait [#allocation5], 512  }
  0x1f   :  { %229 = vsyncadd [#allocation5], 4294966784 }
  0x20   :  { %144 = vsyncpa [#allocation4], 1 }
  0x21   :  { %145 = vsyncpa [#allocation7], 1 }
  0x22   :  { %146 = vsyncpa [#allocation5], 1 }

</bundles_post_ra>
